<compile_context>
chip_gen: v7x
topology: tpu7x:2x2x1
jax: 0.10.0
libtpu: 0.0.40
codegen_flags: <defaults>
</compile_context>

<pallas_src>
import functools

import jax
import jax.numpy as jnp
from jax.experimental import pallas as pl
from jax.experimental.pallas import tpu as pltpu

_SUB = 8      # sublane multiple
_H = 128      # hidden width (layers 1 & 2; layer-3 width 64 is zero-padded to 128)


def _round_up(n, m):
    return ((n + m - 1) // m) * m


def _mlp_kernel(x_ref, w1_ref, wcat_ref, bcat_ref, o_ref):
    """4-layer MLP: bf16 matmuls on the MXU, f32 accumulate / bias / ReLU."""
    out_dim = o_ref.shape[-1]

    # Layer 1: (tb, in_pad) @ (in_pad, 128)  — K is tiny (8); MXU cost is irrelevant.
    h = jnp.dot(x_ref[...].astype(jnp.bfloat16), w1_ref[...],
                preferred_element_type=jnp.float32)
    h = jnp.maximum(h + bcat_ref[:, 0 * _H:1 * _H], 0.0)

    # Layer 2: (tb, 128) @ (128, 128)
    h = jnp.dot(h.astype(jnp.bfloat16), wcat_ref[:, 0 * _H:1 * _H],
                preferred_element_type=jnp.float32)
    h = jnp.maximum(h + bcat_ref[:, 1 * _H:2 * _H], 0.0)

    # Layer 3: true width 64, zero-padded to 128 (padded lanes stay exactly 0 through ReLU).
    h = jnp.dot(h.astype(jnp.bfloat16), wcat_ref[:, 1 * _H:2 * _H],
                preferred_element_type=jnp.float32)
    h = jnp.maximum(h + bcat_ref[:, 2 * _H:3 * _H], 0.0)

    # Layer 4: logits head computed at 128 lanes (zero rows/cols of padded w4 keep the
    # extra lanes exact); only the true out_dim lanes are written back -> tiny HBM writeback.
    logits = jnp.dot(h.astype(jnp.bfloat16), wcat_ref[:, 2 * _H:3 * _H],
                     preferred_element_type=jnp.float32)
    logits = logits + bcat_ref[:, 3 * _H:4 * _H]
    o_ref[...] = logits[:, :out_dim].astype(o_ref.dtype)


def pack_params(params):
    """Pad / cast / concatenate parameters ONCE (hoisted out of the per-call path).

    Returns (w1, wcat, bcat, out_dim):
      w1   : (in_pad, 128)  bf16, in_pad = round_up(in_dim, 8), zero rows past in_dim
      wcat : (128, 384)     bf16, [ w2 | w3 (64->128 cols padded) | w4 (64->128 rows padded) ]
      bcat : (1, 512)       f32,  [ b1 | b2 | b3 padded | b4 padded ]
    Note: weights are quantized to bf16 once (f32 accumulate in-kernel); results differ from
    a pure-f32 PyTorch forward by ~1e-2 relative at most — fine for a policy net.
    """
    in_dim = params["w1"].shape[0]
    h3 = params["w3"].shape[1]
    out_dim = int(params["w4"].shape[1])
    in_pad = _round_up(max(in_dim, _SUB), _SUB)

    def bf16(a):
        return a.astype(jnp.bfloat16)

    w1 = jnp.zeros((in_pad, _H), jnp.bfloat16).at[:in_dim, :].set(bf16(params["w1"]))
    w2 = bf16(params["w2"])
    w3 = jnp.zeros((_H, _H), jnp.bfloat16).at[:, :h3].set(bf16(params["w3"]))
    w4 = jnp.zeros((_H, _H), jnp.bfloat16).at[:h3, :out_dim].set(bf16(params["w4"]))
    wcat = jnp.concatenate([w2, w3, w4], axis=1)                       # (128, 384)

    def pad_b(b):
        return jnp.zeros((1, _H), jnp.float32).at[:, :b.shape[1]].set(b.astype(jnp.float32))

    bcat = jnp.concatenate([pad_b(params["b1"]), pad_b(params["b2"]),
                            pad_b(params["b3"]), pad_b(params["b4"])], axis=1)  # (1, 512)
    return w1, wcat, bcat, out_dim


@functools.partial(jax.jit, static_argnames=("out_dim", "batch_tile"))
def _forward_impl(x, w1, wcat, bcat, *, out_dim, batch_tile):
    batch, in_dim = x.shape
    in_pad = w1.shape[0]

    # ----- batch tiling ---------------------------------------------------------------
    tb_cap = max(_SUB, (batch_tile // _SUB) * _SUB)      # clamp to a multiple of 8
    batch_pad = _round_up(max(batch, _SUB), _SUB)
    if batch_pad > tb_cap:
        tb = tb_cap
    elif batch_pad >= 1024:
        # Mid-size batch: use 2 grid steps so v7x's 2 TensorCores both get work.
        tb = _round_up((batch_pad + 1) // 2, _SUB)
    else:
        tb = batch_pad                                    # tiny batch -> single step
    batch_pad = _round_up(batch_pad, tb)
    grid = (batch_pad // tb,)

    # Narrow pad only: features -> in_pad (=8), batch -> multiple of tb.  Fused under jit.
    x_pad = jnp.pad(x.astype(jnp.float32),
                    ((0, batch_pad - batch), (0, in_pad - in_dim)))

    def resident(shape):
        # Same block every grid step -> stays VMEM-resident, fetched once.
        return pl.BlockSpec(shape, lambda i: (0, 0))

    out = pl.pallas_call(
        _mlp_kernel,
        out_shape=jax.ShapeDtypeStruct((batch_pad, out_dim), jnp.float32),
        grid=grid,
        in_specs=[
            pl.BlockSpec((tb, in_pad), lambda i: (i, 0)),   # x tile (narrow, f32)
            resident((in_pad, _H)),                         # w1
            resident(wcat.shape),                           # [w2 | w3 | w4]  bf16
            resident(bcat.shape),                           # [b1 | b2 | b3 | b4] f32
        ],
        out_specs=pl.BlockSpec((tb, out_dim), lambda i: (i, 0)),   # narrow logits
        compiler_params=pltpu.CompilerParams(
            dimension_semantics=("parallel",),
        ),
    )(x_pad, w1, wcat, bcat)

    return out[:batch]


def enhanced_policy_network_forward(x, packed_params, *, batch_tile=4096):
    """x: (B, input_dim) float32. packed_params: output of pack_params().

    Returns logits (B, output_dim) float32.
    """
    w1, wcat, bcat, out_dim = packed_params
    return _forward_impl(x, w1, wcat, bcat,
                         out_dim=int(out_dim), batch_tile=int(batch_tile))


def init_params(key, input_dim, output_dim):
    """Deterministic synthetic init (PyTorch-Linear-like uniform bounds), f32 master copy.

    Weights stored transposed vs PyTorch: (in_features, out_features), y = x @ W + b.
    """
    def linear(k, fan_in, fan_out):
        kw, kb = jax.random.split(k)
        bound = 1.0 / jnp.sqrt(fan_in)
        w = jax.random.uniform(kw, (fan_in, fan_out), jnp.float32, -bound, bound)
        b = jax.random.uniform(kb, (1, fan_out), jnp.float32, -bound, bound)
        return w, b

    k1, k2, k3, k4 = jax.random.split(key, 4)
    w1, b1 = linear(k1, input_dim, 128)
    w2, b2 = linear(k2, 128, 128)
    w3, b3 = linear(k3, 128, 64)
    w4, b4 = linear(k4, 64, output_dim)
    return dict(w1=w1, b1=b1, w2=w2, b2=b2, w3=w3, b3=b3, w4=w4, b4=b4)


def _reference_forward(x, p):
    """Pure-JAX reference with the same bf16-matmul / f32-accumulate semantics."""
    def dot(a, w):
        return jnp.dot(a.astype(jnp.bfloat16), w.astype(jnp.bfloat16),
                       preferred_element_type=jnp.float32)
    h = jnp.maximum(dot(x, p["w1"]) + p["b1"], 0.0)
    h = jnp.maximum(dot(h, p["w2"]) + p["b2"], 0.0)
    h = jnp.maximum(dot(h, p["w3"]) + p["b3"], 0.0)
    return dot(h, p["w4"]) + p["b4"]


if __name__ == "__main__":
    key = jax.random.PRNGKey(0)
    k_params, k_x1, k_x2, k_x3 = jax.random.split(key, 4)

    input_dim, output_dim = 4, 2   # CartPole-like dims
    params = init_params(k_params, input_dim, output_dim)
    packed = pack_params(params)   # padded / cast / concatenated ONCE, reused per call

    # Case 1: tiny batch -> single grid step.
    x1 = jax.random.normal(k_x1, (8, input_dim), jnp.float32)
    out1 = jax.block_until_ready(enhanced_policy_network_forward(x1, packed))
    ref1 = _reference_forward(x1, params)
    assert out1.shape == (8, output_dim)
    assert jnp.allclose(out1, ref1, atol=1e-3, rtol=1e-3), "mismatch vs reference (case 1)"

    # Case 2: odd batch + small batch_tile -> multi-step batch grid + padding/slicing.
    x2 = jax.random.normal(k_x2, (37, input_dim), jnp.float32)
    out2 = jax.block_until_ready(
        enhanced_policy_network_forward(x2, packed, batch_tile=16))
    ref2 = _reference_forward(x2, params)
    assert out2.shape == (37, output_dim)
    assert jnp.allclose(out2, ref2, atol=1e-3, rtol=1e-3), "mismatch vs reference (case 2)"

    # Case 3: mid-size batch -> automatic 2-step split (keeps both v7x TensorCores busy).
    x3 = jax.random.normal(k_x3, (1500, input_dim), jnp.float32)
    out3 = jax.block_until_ready(enhanced_policy_network_forward(x3, packed))
    ref3 = _reference_forward(x3, params)
    assert out3.shape == (1500, output_dim)
    assert jnp.allclose(out3, ref3, atol=1e-3, rtol=1e-3), "mismatch vs reference (case 3)"

    # TODO(synk): get_action (softmax + multinomial sampling) is host/driver-side policy
    # logic, intentionally left outside the kernel.
    print("KERNEL_OK")
</pallas_src>

<mosaic_0001>
module attributes {stable_mosaic.version = 11 : i64} {
  func.func @_mlp_kernel(%arg0: i32, %arg1: memref<8x8xf32, #tpu.memory_space<vmem>>, %arg2: memref<8x128xbf16, #tpu.memory_space<vmem>>, %arg3: memref<128x384xbf16, #tpu.memory_space<vmem>>, %arg4: memref<1x512xf32, #tpu.memory_space<vmem>>, %arg5: memref<8x2xf32, #tpu.memory_space<vmem>>) attributes {dimension_semantics = [#tpu.dimension_semantics<parallel>], iteration_bounds = array<i64: 1>, scalar_prefetch = 0 : i64, scratch_operands = 0 : i64, tpu.core_type = #tpu.core_type<tc>, window_params = [{transform_indices = @transform_0, window_bounds = array<i64: 8, 8>}, {pipeline_mode = #tpu.pipeline_mode<synchronous>, transform_indices = @transform_1, window_bounds = array<i64: 8, 128>}, {pipeline_mode = #tpu.pipeline_mode<synchronous>, transform_indices = @transform_2, window_bounds = array<i64: 128, 384>}, {pipeline_mode = #tpu.pipeline_mode<synchronous>, transform_indices = @transform_3, window_bounds = array<i64: 1, 512>}, {transform_indices = @transform_4, window_bounds = array<i64: 8, 2>}]} {
    %c0 = arith.constant 0 : index
    %c0_0 = arith.constant 0 : index
    %0 = vector.load %arg1[%c0, %c0_0] : memref<8x8xf32, #tpu.memory_space<vmem>>, vector<8x8xf32>
    %1 = arith.truncf %0 : vector<8x8xf32> to vector<8x8xbf16>
    %c0_1 = arith.constant 0 : index
    %c0_2 = arith.constant 0 : index
    %2 = vector.load %arg2[%c0_1, %c0_2] : memref<8x128xbf16, #tpu.memory_space<vmem>>, vector<8x128xbf16>
    %cst = arith.constant dense<0.000000e+00> : vector<8x128xf32>
    %3 = tpu.matmul %1, %2, %cst {dimension_numbers = #tpu.dot_dimension_numbers<[1], [0], [0], [1], [0, 0, 1, 1], [], []>} : vector<8x8xbf16>, vector<8x128xbf16>, vector<8x128xf32> -> vector<8x128xf32>
    %c0_3 = arith.constant 0 : index
    %c0_4 = arith.constant 0 : index
    %4 = vector.load %arg4[%c0_3, %c0_4] : memref<1x512xf32, #tpu.memory_space<vmem>>, vector<1x128xf32>
    %5 = vector.broadcast %4 : vector<1x128xf32> to vector<8x128xf32>
    %6 = arith.addf %3, %5 : vector<8x128xf32>
    %cst_5 = arith.constant 0.000000e+00 : f32
    %7 = vector.broadcast %cst_5 : f32 to vector<8x128xf32>
    %8 = arith.maximumf %6, %7 : vector<8x128xf32>
    %9 = arith.truncf %8 : vector<8x128xf32> to vector<8x128xbf16>
    %c0_6 = arith.constant 0 : index
    %c0_7 = arith.constant 0 : index
    %10 = vector.load %arg3[%c0_6, %c0_7] : memref<128x384xbf16, #tpu.memory_space<vmem>>, vector<128x128xbf16>
    %cst_8 = arith.constant dense<0.000000e+00> : vector<8x128xf32>
    %11 = tpu.matmul %9, %10, %cst_8 {dimension_numbers = #tpu.dot_dimension_numbers<[1], [0], [0], [1], [0, 0, 1, 1], [], []>} : vector<8x128xbf16>, vector<128x128xbf16>, vector<8x128xf32> -> vector<8x128xf32>
    %c0_9 = arith.constant 0 : index
    %c128 = arith.constant 128 : index
    %12 = vector.load %arg4[%c0_9, %c128] : memref<1x512xf32, #tpu.memory_space<vmem>>, vector<1x128xf32>
    %13 = vector.broadcast %12 : vector<1x128xf32> to vector<8x128xf32>
    %14 = arith.addf %11, %13 : vector<8x128xf32>
    %cst_10 = arith.constant 0.000000e+00 : f32
    %15 = vector.broadcast %cst_10 : f32 to vector<8x128xf32>
    %16 = arith.maximumf %14, %15 : vector<8x128xf32>
    %17 = arith.truncf %16 : vector<8x128xf32> to vector<8x128xbf16>
    %c0_11 = arith.constant 0 : index
    %c128_12 = arith.constant 128 : index
    %18 = vector.load %arg3[%c0_11, %c128_12] : memref<128x384xbf16, #tpu.memory_space<vmem>>, vector<128x128xbf16>
    %cst_13 = arith.constant dense<0.000000e+00> : vector<8x128xf32>
    %19 = tpu.matmul %17, %18, %cst_13 {dimension_numbers = #tpu.dot_dimension_numbers<[1], [0], [0], [1], [0, 0, 1, 1], [], []>} : vector<8x128xbf16>, vector<128x128xbf16>, vector<8x128xf32> -> vector<8x128xf32>
    %c0_14 = arith.constant 0 : index
    %c256 = arith.constant 256 : index
    %20 = vector.load %arg4[%c0_14, %c256] : memref<1x512xf32, #tpu.memory_space<vmem>>, vector<1x128xf32>
    %21 = vector.broadcast %20 : vector<1x128xf32> to vector<8x128xf32>
    %22 = arith.addf %19, %21 : vector<8x128xf32>
    %cst_15 = arith.constant 0.000000e+00 : f32
    %23 = vector.broadcast %cst_15 : f32 to vector<8x128xf32>
    %24 = arith.maximumf %22, %23 : vector<8x128xf32>
    %25 = arith.truncf %24 : vector<8x128xf32> to vector<8x128xbf16>
    %c0_16 = arith.constant 0 : index
    %c256_17 = arith.constant 256 : index
    %26 = vector.load %arg3[%c0_16, %c256_17] : memref<128x384xbf16, #tpu.memory_space<vmem>>, vector<128x128xbf16>
    %cst_18 = arith.constant dense<0.000000e+00> : vector<8x128xf32>
    %27 = tpu.matmul %25, %26, %cst_18 {dimension_numbers = #tpu.dot_dimension_numbers<[1], [0], [0], [1], [0, 0, 1, 1], [], []>} : vector<8x128xbf16>, vector<128x128xbf16>, vector<8x128xf32> -> vector<8x128xf32>
    %c0_19 = arith.constant 0 : index
    %c384 = arith.constant 384 : index
    %28 = vector.load %arg4[%c0_19, %c384] : memref<1x512xf32, #tpu.memory_space<vmem>>, vector<1x128xf32>
    %29 = vector.broadcast %28 : vector<1x128xf32> to vector<8x128xf32>
    %30 = arith.addf %27, %29 : vector<8x128xf32>
    %31 = vector.extract_strided_slice %30 {offsets = [0, 0], sizes = [8, 2], strides = [1, 1]} : vector<8x128xf32> to vector<8x2xf32>
    %c0_20 = arith.constant 0 : index
    %c0_21 = arith.constant 0 : index
    %32 = vector.load %arg5[%c0_20, %c0_21] : memref<8x2xf32, #tpu.memory_space<vmem>>, vector<8x2xf32>
    tpu.vector_store %arg5[%c0_20, %c0_21], %31 {strides = array<i32>} : memref<8x2xf32, #tpu.memory_space<vmem>>, vector<8x2xf32>,
    return
  }
  func.func @transform_0(%arg0: i32) -> (i32, i32) {
    %c0_i32 = arith.constant 0 : i32
    %c0_i32_0 = arith.constant 0 : i32
    return %arg0, %c0_i32 : i32, i32
  }
  func.func @transform_1(%arg0: i32) -> (i32, i32) {
    %c0_i32 = arith.constant 0 : i32
    %c0_i32_0 = arith.constant 0 : i32
    %c0_i32_1 = arith.constant 0 : i32
    return %c0_i32, %c0_i32_0 : i32, i32
  }
  func.func @transform_2(%arg0: i32) -> (i32, i32) {
    %c0_i32 = arith.constant 0 : i32
    %c0_i32_0 = arith.constant 0 : i32
    %c0_i32_1 = arith.constant 0 : i32
    return %c0_i32, %c0_i32_0 : i32, i32
  }
  func.func @transform_3(%arg0: i32) -> (i32, i32) {
    %c0_i32 = arith.constant 0 : i32
    %c0_i32_0 = arith.constant 0 : i32
    %c0_i32_1 = arith.constant 0 : i32
    return %c0_i32, %c0_i32_0 : i32, i32
  }
  func.func @transform_4(%arg0: i32) -> (i32, i32) {
    %c0_i32 = arith.constant 0 : i32
    %c0_i32_0 = arith.constant 0 : i32
    return %arg0, %c0_i32 : i32, i32
  }
}

</mosaic_0001>

<bundles_post_ra>
// kernel: _forward_impl.1
= control target key start
LH: loop header
LB: loop body
LE: loop exit
PB: predicated region body
PF: predicated region fallthrough
CT: control target
= control target key end

     0   :  { %9 = vsyncpa [#allocation3], 0  ;;  %s613_s15 = smov [#allocation2]   ;;  %s709_s0 = inlined_call_operand.vmem [shape: f32[8,8], index: 0, kind: input, shape index: {}]   ;;  %s710_s1 = inlined_call_operand.vmem [shape: bf16[8,128], index: 1, kind: input, shape index: {}]   ;;  %s711_s2 = inlined_call_operand.hbm [shape: bf16[128,384], index: 2, kind: input, shape index: {}]   ;;  %s712_s3 = inlined_call_operand.vmem [shape: f32[1,512], index: 3, kind: input, shape index: {}]   ;;  %s713_s4 = inlined_call_operand.vmem [shape: f32[8,2], index: 4, kind: output, shape index: {}]  }
   0x1   :  { %s19_s16 = sshll.u32 %s613_s15, 4  ;;  %s589_s19 = scalar_lea.hbm %s711_s2, 3072  ;;  %s20_s16 = int_to_ptr.vmem [resolvable:$true] %s19_s16 }
   0x2   :  { %p590_p0 = scmp.ne.s32.totalorder %s711_s2, %s589_s19  ;;  %p593_p1 = scmp.lt.u32.totalorder %s589_s19, %s711_s2 }
   0x4   :  { %p595_p2 = pnand %p593_p1, %p590_p0 }
   0x6   :  { %598 = shalt.err (!%p595_p2)
}
   0x7   :  { %s599_s24 = scalar_lea.vmem %s20_s16, 3072  ;;  %p604_p4 = scmp.lt.s32.totalorder %s20_s16, %s20_s16 }
   0x8   :  { %p600_p3 = scmp.ne.s32.totalorder %s20_s16, %s599_s24  ;;  %p605_p5 = scmp.lt.s32.totalorder %s599_s24, %s599_s24 }
   0xa   :  { %p606_p6 = por %p605_p5, %p604_p4 }
   0xc   :  { %p607_p7 = pnand %p606_p6, %p600_p3 }
   0xe   :  { %610 = shalt.err (!%p607_p7)
}
   0xf   :  { %s614_s25 = smov 192   ;;  %s615_s26 = smov 12  }
  0x10   :  { %25 = dma.hbm_to_vmem [thread:$0]  %s711_s2, 3072, %s20_s16, [#allocation3], %s614_s25, %s614_s25, %s615_s26  }
  0x11   :  { %611 = dma.done.wait [#allocation3], 3072  }
  0x12   :  { %612 = vsyncadd [#allocation3], 4294964224  ;;  %v616_v0 = vmov 0.0   ;;  %vm617_vm0 = vmmov 0   ;;  %vm46_vm1 = vcmask 1043456   ;;  %v32_v2 = vld [vmem:[%s709_s0] sm:$0xff] }
  0x13   :  { %494 = vmatprep.subr.bf16.mxu0 %v616_v0  ;;  %496 = vmatprep.mubr.msk.bf16.mxu0 %vm617_vm0, %v616_v0  ;;  %v34_v1 = vld [vmem:[%s710_s1] sm:$0xf]  ;;  %v33_v4 = vpack.c.bf16 %v32_v2, %v32_v2  ;;  %vm42_vm2 = vcmask 64512   ;;  %v566_v6 = vld [vmem:[#allocation2 + $0x18] ss:$12 sps:$4 sm:$0xff]   ;;  %vm429_vm3 = vcmask 15360  }
  0x14   :  { %500 = vmatprep.subr.bf16.mxu1 %v616_v0  ;;  %516 = vmatprep.mubr.msk.bf16.mxu1 %vm617_vm0, %v616_v0  ;;  %v48_v3 = vsel %vm46_vm1, %v34_v1, 0  ;;  %v565_v5 = vld [vmem:[#allocation2] ss:$12 sps:$4 sm:$0xff]   ;;  %v567_v7 = vld [vmem:[#allocation2 + $0x30] ss:$12 sps:$4 sm:$0xff]  }
  0x15   :  { %495 = vmatpush3.bf16.msra.mxu0 %v48_v3  ;;  %501 = vmatpush3.bf16.msra.mxu1 %v565_v5  ;;  %v568_v8 = vld [vmem:[#allocation2 + $0x48] ss:$12 sps:$4 sm:$0xff]   ;;  %v569_v9 = vld [vmem:[#allocation2 + $0x60] ss:$12 sps:$4 sm:$0xff]   ;;  %v570_v10 = vld [vmem:[#allocation2 + $0x78] ss:$12 sps:$4 sm:$0xff]  }
  0x16   :  { %520 = vmatprep.subr.bf16.mxu0 %v616_v0  ;;  %502 = vmatprep.subr.bf16.mxu1 %v616_v0  ;;  %v571_v11 = vld [vmem:[#allocation2 + $0x90] ss:$12 sps:$4 sm:$0xff]   ;;  %v572_v12 = vld [vmem:[#allocation2 + $0xa8] ss:$12 sps:$4 sm:$0xff]   ;;  %v576_v16 = vld [vmem:[#allocation2 + $0x4c] ss:$12 sps:$4 sm:$0xff]  }
  0x17   :  { %v573_v13 = vld [vmem:[#allocation2 + $0x4] ss:$12 sps:$4 sm:$0xff]   ;;  %v574_v14 = vld [vmem:[#allocation2 + $0x1c] ss:$12 sps:$4 sm:$0xff]   ;;  %v575_v15 = vld [vmem:[#allocation2 + $0x34] ss:$12 sps:$4 sm:$0xff]  }
  0x18   :  { %497 = vmatmul.mubr.msk.bf16.vlgmr.msra.gmra.mrb[0].mxu0 %vm42_vm2, %v33_v4  ;;  %v577_v17 = vld [vmem:[#allocation2 + $0x64] ss:$12 sps:$4 sm:$0xff]   ;;  %v578_v18 = vld [vmem:[#allocation2 + $0x7c] ss:$12 sps:$4 sm:$0xff]   ;;  %v436_v19 = vld [vmem:[%s712_s3] ss:$0 sm:$0xff] }
  0x19   :  { %536 = vmatprep.mubr.msk.bf16.mxu0 %vm617_vm0, %v616_v0  ;;  %503 = vmatpush3.bf16.msra.mxu1 %v566_v6  ;;  %v579_v27 = vld [vmem:[#allocation2 + $0x94] ss:$12 sps:$4 sm:$0xff]   ;;  %v580_v28 = vld [vmem:[#allocation2 + $0xac] ss:$12 sps:$4 sm:$0xff]   ;;  %v584_v32 = vld [vmem:[#allocation2 + $0x50] ss:$12 sps:$4 sm:$0xff]  }
  0x1a   :  { %504 = vmatprep.subr.bf16.mxu1 %v616_v0  ;;  %521 = vmatpush3.bf16.msra.mxu0 %v573_v13  ;;  %v581_v29 = vld [vmem:[#allocation2 + $0x8] ss:$12 sps:$4 sm:$0xff]   ;;  %v582_v30 = vld [vmem:[#allocation2 + $0x20] ss:$12 sps:$4 sm:$0xff]   ;;  %v583_v31 = vld [vmem:[#allocation2 + $0x38] ss:$12 sps:$4 sm:$0xff]  }
  0x1b   :  { %522 = vmatprep.subr.bf16.mxu0 %v616_v0  ;;  %v585_v33 = vld [vmem:[#allocation2 + $0x68] ss:$12 sps:$4 sm:$0xff]   ;;  %v586_v34 = vld [vmem:[#allocation2 + $0x80] ss:$12 sps:$4 sm:$0xff]   ;;  %v587_v43 = vld [vmem:[#allocation2 + $0x98] ss:$12 sps:$4 sm:$0xff]  }
  0x1c   :  { %v438_v35 = vld [vmem:[%s712_s3 + $0x1] ss:$0 sm:$0xff]  ;;  %v588_v44 = vld [vmem:[#allocation2 + $0xb0] ss:$12 sps:$4 sm:$0xff]   ;;  %v447_v45 = vld [vmem:[%s712_s3 + $0x2] ss:$0 sm:$0xff] }
  0x1d   :  { %505 = vmatpush3.bf16.msra.mxu1 %v567_v7  ;;  %v456_v53 = vld [vmem:[%s712_s3 + $0x3] ss:$0 sm:$0xff] }
  0x1e   :  { %506 = vmatprep.subr.bf16.mxu1 %v616_v0  ;;  %523 = vmatpush3.bf16.msra.mxu0 %v574_v14 }
  0x1f   :  { %524 = vmatprep.subr.bf16.mxu0 %v616_v0 }
  0x21   :  { %507 = vmatpush3.bf16.msra.mxu1 %v568_v8 }
  0x22   :  { %508 = vmatprep.subr.bf16.mxu1 %v616_v0  ;;  %525 = vmatpush3.bf16.msra.mxu0 %v575_v15 }
  0x23   :  { %526 = vmatprep.subr.bf16.mxu0 %v616_v0 }
  0x25   :  { %509 = vmatpush3.bf16.msra.mxu1 %v569_v9 }
  0x26   :  { %510 = vmatprep.subr.bf16.mxu1 %v616_v0  ;;  %527 = vmatpush3.bf16.msra.mxu0 %v576_v16 }
  0x27   :  { %528 = vmatprep.subr.bf16.mxu0 %v616_v0 }
  0x29   :  { %511 = vmatpush3.bf16.msra.mxu1 %v570_v10 }
  0x2a   :  { %512 = vmatprep.subr.bf16.mxu1 %v616_v0  ;;  %529 = vmatpush3.bf16.msra.mxu0 %v577_v17 }
  0x2b   :  { %530 = vmatprep.subr.bf16.mxu0 %v616_v0 }
  0x2d   :  { %513 = vmatpush3.bf16.msra.mxu1 %v571_v11 }
  0x2e   :  { %514 = vmatprep.subr.bf16.mxu1 %v616_v0  ;;  %531 = vmatpush3.bf16.msra.mxu0 %v578_v18 }
  0x2f   :  { %532 = vmatprep.subr.bf16.mxu0 %v616_v0 }
  0x31   :  { %515 = vmatpush3.bf16.msra.mxu1 %v572_v12 }
  0x32   :  { %540 = vmatprep.subr.bf16.mxu1 %v616_v0  ;;  %533 = vmatpush3.bf16.msra.mxu0 %v579_v27 }
  0x33   :  { %534 = vmatprep.subr.bf16.mxu0 %v616_v0 }
  0x36   :  { %535 = vmatpush3.bf16.msra.mxu0 %v580_v28 }
  0xeb   :  { %v84_v20 = vpop.f32.mrb[0].mxu0 }
  0xec   :  { %v85_v21 = vadd.f32 %v436_v19, %v84_v20  ;;  %v498_v22 = vpop.f32.mrb[1].mxu0 }
  0xed   :  { %v87_v23 = vpop.f32.mrb[2].mxu0 }
  0xee   :  { %v90_v24 = vmax.f32 %v85_v21, 0.0  ;;  %v499_v25 = vpop.f32.mrb[3].mxu0 }
  0xf0   :  { %v91_v26 = vpack.c.bf16 %v90_v24, %v90_v24 }
  0xf2   :  { %517 = vmatmul.mubr.bf16.vlgmr.msra.gmra.mrb[0].mxu1 %v91_v26 }
  0xf3   :  { %556 = vmatprep.mubr.msk.bf16.mxu1 %vm617_vm0, %v616_v0  ;;  %541 = vmatpush3.bf16.msra.mxu1 %v581_v29 }
  0xf4   :  { %542 = vmatprep.subr.bf16.mxu1 %v616_v0 }
  0xf7   :  { %543 = vmatpush3.bf16.msra.mxu1 %v582_v30 }
  0xf8   :  { %544 = vmatprep.subr.bf16.mxu1 %v616_v0 }
  0xfb   :  { %545 = vmatpush3.bf16.msra.mxu1 %v583_v31 }
  0xfc   :  { %546 = vmatprep.subr.bf16.mxu1 %v616_v0 }
  0xff   :  { %547 = vmatpush3.bf16.msra.mxu1 %v584_v32 }
 0x100   :  { %548 = vmatprep.subr.bf16.mxu1 %v616_v0 }
 0x103   :  { %549 = vmatpush3.bf16.msra.mxu1 %v585_v33 }
 0x104   :  { %550 = vmatprep.subr.bf16.mxu1 %v616_v0 }
 0x107   :  { %551 = vmatpush3.bf16.msra.mxu1 %v586_v34 }
 0x108   :  { %552 = vmatprep.subr.bf16.mxu1 %v616_v0 }
 0x10b   :  { %553 = vmatpush3.bf16.msra.mxu1 %v587_v43 }
 0x10c   :  { %554 = vmatprep.subr.bf16.mxu1 %v616_v0 }
 0x10f   :  { %555 = vmatpush3.bf16.msra.mxu1 %v588_v44 }
 0x1c5   :  { %v197_v36 = vpop.f32.mrb[0].mxu1 }
 0x1c6   :  { %v198_v37 = vadd.f32 %v438_v35, %v197_v36  ;;  %v518_v38 = vpop.f32.mrb[1].mxu1 }
 0x1c7   :  { %v200_v39 = vpop.f32.mrb[2].mxu1 }
 0x1c8   :  { %v203_v40 = vmax.f32 %v198_v37, 0.0  ;;  %v519_v41 = vpop.f32.mrb[3].mxu1 }
 0x1ca   :  { %v204_v42 = vpack.c.bf16 %v203_v40, %v203_v40 }
 0x1cc   :  { %537 = vmatmul.mubr.bf16.vlgmr.msra.gmra.mrb[4].mxu0 %v204_v42 }
 0x29f   :  { %v310_v46 = vpop.f32.mrb[4].mxu0 }
 0x2a0   :  { %v311_v47 = vadd.f32 %v447_v45, %v310_v46  ;;  %v538_v48 = vpop.f32.mrb[5].mxu0 }
 0x2a1   :  { %v313_v49 = vpop.f32.mrb[6].mxu0 }
 0x2a2   :  { %v316_v50 = vmax.f32 %v311_v47, 0.0  ;;  %v539_v51 = vpop.f32.mrb[7].mxu0 }
 0x2a4   :  { %v317_v52 = vpack.c.bf16 %v316_v50, %v316_v50 }
 0x2a6   :  { %557 = vmatmul.mubr.bf16.vlgmr.msra.gmra.mrb[4].mxu1 %v317_v52 }
 0x379   :  { %v423_v54 = vpop.f32.mrb[4].mxu1 }
 0x37a   :  { %v424_v55 = vadd.f32 %v456_v53, %v423_v54  ;;  %v558_v56 = vpop.f32.mrb[5].mxu1 }
 0x37b   :  { %v426_v57 = vpop.f32.mrb[6].mxu1 }
 0x37c   :  { %430 = vst.msk [vmem:[%s713_s4] sm:$0xff] %vm429_vm3, %v424_v55  ;;  %v559_v58 = vpop.f32.mrb[7].mxu1 }
 0x37d   :  { %435 = vsyncpa [#allocation3], 1 }

</bundles_post_ra>
